<compile_context>
chip_gen: v6e
topology: v6e:2x2x1
jax: 0.10.0
libtpu: 0.0.40
codegen_flags: <defaults>
</compile_context>

<pallas_src>
import functools

import jax
import jax.numpy as jnp
from jax.experimental import pallas as pl
from jax.experimental.pallas import tpu as pltpu


def _focal_kernel(logits_ref, labels_ref, alpha_ref, out_ref, *, gamma):
    # logits_ref: (C, T) float   -- classes on sublanes, pixels on lanes
    # labels_ref: (1, T) int32
    # alpha_ref:  (C, 1) float32 -- per-class weights (the registered buffer)
    # out_ref:    (1, T) float32
    x = logits_ref[...].astype(jnp.float32)                        # (C, T)
    lab = labels_ref[...]                                          # (1, T)
    a = alpha_ref[...].astype(jnp.float32)                         # (C, 1)

    # log-softmax over the class (sublane) axis
    m = jnp.max(x, axis=0, keepdims=True)                          # (1, T)
    ex = jnp.exp(x - m)                                            # (C, T)
    lse = jnp.log(jnp.sum(ex, axis=0, keepdims=True)) + m          # (1, T)

    # one-hot "gather" of the label class along the sublane axis
    cls = jax.lax.broadcasted_iota(jnp.int32, x.shape, 0)          # (C, T)
    onehot = (cls == lab).astype(jnp.float32)                      # (C, T)
    logit_y = jnp.sum(x * onehot, axis=0, keepdims=True)           # (1, T)
    w = jnp.sum(a * onehot, axis=0, keepdims=True)                 # (1, T) = alpha[y]

    log_p = logit_y - lse                                          # (1, T)
    p = jnp.exp(log_p)
    xent = -w * log_p                                              # weighted CE, reduction='none'

    # (1 - p) ** gamma: clamp the base at 0; integer gamma -> multiply chain
    # (VPU only, no EUP exp/log pair, no negative-base NaN hazard).
    q = jnp.maximum(1.0 - p, 0.0)
    if float(gamma) == int(gamma) and int(gamma) >= 0:
        qg = jnp.ones_like(q)
        for _ in range(int(gamma)):
            qg = qg * q
    else:
        qg = q ** jnp.float32(gamma)

    out_ref[...] = (qg * xent).astype(out_ref.dtype)


def _pick_tile_hw(hw, c, itemsize, budget_bytes=8 << 20):
    """Largest lane-dense pixel tile whose double-buffered logits block fits budget."""
    max_px = budget_bytes // max(1, 2 * c * itemsize)
    if hw <= max_px:
        return hw                          # whole image row: block == full array dim
    return max(128, (max_px // 128) * 128)  # multiple of 128 -> lane-aligned blocks


def focal_loss(logits_nchw, labels_nhw, gamma, alpha=None, reduction="none",
               tile_hw=None):
    """Pallas implementation of FocalLoss.forward.

    logits_nchw: (N, C, H, W) float (f32 or bf16)
    labels_nhw:  (N, H, W) int
    """
    N, C, H, W = logits_nchw.shape
    HW = H * W

    if alpha is None:
        alpha = jnp.ones((C,), jnp.float32)

    # Zero-copy re-layout: pixels stay on the fast (lane) axis, classes become
    # the sublane/reduction axis.  No transpose, no extra HBM pass.
    logits = logits_nchw.reshape(N, C, HW)
    labels = labels_nhw.astype(jnp.int32).reshape(N, 1, HW)
    alpha_c1 = alpha.astype(jnp.float32).reshape(C, 1)

    if tile_hw is None:
        tile_hw = _pick_tile_hw(HW, C, jnp.dtype(logits.dtype).itemsize)
    grid = (N, pl.cdiv(HW, tile_hw))

    out = pl.pallas_call(
        functools.partial(_focal_kernel, gamma=float(gamma)),
        out_shape=jax.ShapeDtypeStruct((N, 1, HW), jnp.float32),
        grid_spec=pltpu.PrefetchScalarGridSpec(
            num_scalar_prefetch=0,
            grid=grid,
            in_specs=[
                pl.BlockSpec((None, C, tile_hw), lambda n, t: (n, 0, t)),
                pl.BlockSpec((None, 1, tile_hw), lambda n, t: (n, 0, t)),
                pl.BlockSpec((C, 1), lambda n, t: (0, 0)),
            ],
            out_specs=pl.BlockSpec((None, 1, tile_hw), lambda n, t: (n, 0, t)),
        ),
        compiler_params=pltpu.CompilerParams(
            dimension_semantics=("parallel", "parallel")),
    )(logits, labels, alpha_c1)

    focal = out.reshape(N, H, W)
    if reduction == "none":
        return focal
    elif reduction == "mean":
        # Kept in the wrapper; the P*4-byte re-read is negligible here.
        return jnp.mean(focal)
    else:
        raise ValueError(reduction)


def _focal_ref(logits_nchw, labels_nhw, gamma, alpha=None):
    # pure-JAX reference mirroring the PyTorch module
    C = logits_nchw.shape[1]
    if alpha is None:
        alpha = jnp.ones((C,), jnp.float32)
    logp = jax.nn.log_softmax(logits_nchw.astype(jnp.float32), axis=1)
    onehot = jax.nn.one_hot(labels_nhw, C, axis=1, dtype=jnp.float32)
    logp_y = jnp.sum(logp * onehot, axis=1)                      # (N, H, W)
    w_y = alpha[labels_nhw]                                      # (N, H, W)
    xent = -w_y * logp_y
    p_y = jnp.exp(logp_y)
    return (1.0 - p_y) ** gamma * xent


if __name__ == "__main__":
    key = jax.random.PRNGKey(0)
    N, C, H, W = 2, 4, 16, 16
    gamma = 2.0

    k1, k2 = jax.random.split(key)
    logits = jax.random.normal(k1, (N, C, H, W), jnp.float32)
    labels = jax.random.randint(k2, (N, H, W), 0, C, jnp.int32)
    # Deterministic per-class alpha weights (the registered buffer).
    alpha = jnp.linspace(0.5, 1.5, C, dtype=jnp.float32)

    ref = _focal_ref(logits, labels, gamma, alpha)

    # Default (single-tile) path.
    out = jax.block_until_ready(focal_loss(logits, labels, gamma, alpha=alpha,
                                           reduction="none"))
    assert out.shape == (N, H, W)
    assert jnp.allclose(out, ref, atol=1e-5, rtol=1e-5)

    # Multi-tile path (exercise the pixel-tiling grid explicitly).
    out_t = jax.block_until_ready(focal_loss(logits, labels, gamma, alpha=alpha,
                                             reduction="none", tile_hw=128))
    assert jnp.allclose(out_t, ref, atol=1e-5, rtol=1e-5)

    # 'mean' reduction path.
    m = jax.block_until_ready(focal_loss(logits, labels, gamma, alpha=alpha,
                                         reduction="mean"))
    assert jnp.allclose(m, jnp.mean(ref), atol=1e-5, rtol=1e-5)

    # Non-integer gamma path (generic pow branch), default alpha.
    out_g = jax.block_until_ready(focal_loss(logits, labels, 1.5, alpha=None,
                                             reduction="none"))
    ref_g = _focal_ref(logits, labels, 1.5, None)
    assert jnp.allclose(out_g, ref_g, atol=1e-4, rtol=1e-4)

    print("KERNEL_OK")
</pallas_src>

<mosaic_0001>
module attributes {stable_mosaic.version = 11 : i64} {
  func.func @_focal_kernel(%arg0: i32, %arg1: i32, %arg2: memref<1x4x256xf32, #tpu.memory_space<vmem>>, %arg3: memref<1x1x256xi32, #tpu.memory_space<vmem>>, %arg4: memref<4x1xf32, #tpu.memory_space<vmem>>, %arg5: memref<1x1x256xf32, #tpu.memory_space<vmem>>) attributes {dimension_semantics = [#tpu.dimension_semantics<parallel>, #tpu.dimension_semantics<parallel>], iteration_bounds = array<i64: 2, 1>, scalar_prefetch = 0 : i64, scratch_operands = 0 : i64, tpu.core_type = #tpu.core_type<tc>, window_params = [{transform_indices = @transform_0, window_bounds = array<i64: 1, 4, 256>}, {transform_indices = @transform_1, window_bounds = array<i64: 1, 1, 256>}, {pipeline_mode = #tpu.pipeline_mode<synchronous>, transform_indices = @transform_2, window_bounds = array<i64: 4, 1>}, {transform_indices = @transform_3, window_bounds = array<i64: 1, 1, 256>}]} {
    %c0 = arith.constant 0 : index
    %c0_0 = arith.constant 0 : index
    %c0_1 = arith.constant 0 : index
    %0 = vector.load %arg2[%c0, %c0_0, %c0_1] : memref<1x4x256xf32, #tpu.memory_space<vmem>>, vector<1x4x256xf32>
    %1 = vector.shape_cast %0 : vector<1x4x256xf32> to vector<4x256xf32>
    %c0_2 = arith.constant 0 : index
    %c0_3 = arith.constant 0 : index
    %c0_4 = arith.constant 0 : index
    %2 = vector.load %arg3[%c0_2, %c0_3, %c0_4] : memref<1x1x256xi32, #tpu.memory_space<vmem>>, vector<1x1x256xi32>
    %3 = vector.shape_cast %2 : vector<1x1x256xi32> to vector<1x256xi32>
    %c0_5 = arith.constant 0 : index
    %c0_6 = arith.constant 0 : index
    %4 = vector.load %arg4[%c0_5, %c0_6] : memref<4x1xf32, #tpu.memory_space<vmem>>, vector<4x1xf32>
    %cst = arith.constant dense<0xFF800000> : vector<256xf32>
    %5 = vector.multi_reduction <maximumf>, %1, %cst [0] : vector<4x256xf32> to vector<256xf32>
    %6 = vector.shape_cast %5 : vector<256xf32> to vector<1x256xf32>
    %7 = vector.broadcast %6 : vector<1x256xf32> to vector<4x256xf32>
    %8 = arith.subf %1, %7 : vector<4x256xf32>
    %9 = math.exp %8 : vector<4x256xf32>
    %cst_7 = arith.constant dense<0.000000e+00> : vector<256xf32>
    %10 = vector.multi_reduction <add>, %9, %cst_7 [0] : vector<4x256xf32> to vector<256xf32>
    %11 = vector.shape_cast %10 : vector<256xf32> to vector<1x256xf32>
    %12 = math.log %11 : vector<1x256xf32>
    %13 = arith.addf %12, %6 : vector<1x256xf32>
    %14 = tpu.iota {dimensions = array<i32: 0>} : vector<4x256xi32>
    %15 = vector.broadcast %3 : vector<1x256xi32> to vector<4x256xi32>
    %16 = arith.cmpi eq, %14, %15 : vector<4x256xi32>
    %17 = arith.extui %16 : vector<4x256xi1> to vector<4x256xi32>
    %18 = arith.sitofp %17 : vector<4x256xi32> to vector<4x256xf32>
    %19 = arith.mulf %1, %18 : vector<4x256xf32>
    %cst_8 = arith.constant dense<0.000000e+00> : vector<256xf32>
    %20 = vector.multi_reduction <add>, %19, %cst_8 [0] : vector<4x256xf32> to vector<256xf32>
    %21 = vector.shape_cast %20 : vector<256xf32> to vector<1x256xf32>
    %22 = vector.broadcast %4 : vector<4x1xf32> to vector<4x256xf32>
    %23 = arith.mulf %22, %18 : vector<4x256xf32>
    %cst_9 = arith.constant dense<0.000000e+00> : vector<256xf32>
    %24 = vector.multi_reduction <add>, %23, %cst_9 [0] : vector<4x256xf32> to vector<256xf32>
    %25 = vector.shape_cast %24 : vector<256xf32> to vector<1x256xf32>
    %26 = arith.subf %21, %13 : vector<1x256xf32>
    %27 = math.exp %26 : vector<1x256xf32>
    %cst_10 = arith.constant 0.000000e+00 : f32
    %28 = vector.broadcast %cst_10 : f32 to vector<1x256xf32>
    %29 = arith.subf %28, %25 : vector<1x256xf32>
    %30 = arith.mulf %29, %26 : vector<1x256xf32>
    %cst_11 = arith.constant 1.000000e+00 : f32
    %31 = vector.broadcast %cst_11 : f32 to vector<1x256xf32>
    %32 = arith.subf %31, %27 : vector<1x256xf32>
    %cst_12 = arith.constant 0.000000e+00 : f32
    %33 = vector.broadcast %cst_12 : f32 to vector<1x256xf32>
    %34 = arith.maximumf %32, %33 : vector<1x256xf32>
    %cst_13 = arith.constant 1.000000e+00 : f32
    %35 = vector.broadcast %cst_13 : f32 to vector<1x256xf32>
    %36 = arith.mulf %35, %34 : vector<1x256xf32>
    %37 = arith.mulf %36, %34 : vector<1x256xf32>
    %38 = arith.mulf %37, %30 : vector<1x256xf32>
    %c0_14 = arith.constant 0 : index
    %c0_15 = arith.constant 0 : index
    %c0_16 = arith.constant 0 : index
    %39 = vector.load %arg5[%c0_14, %c0_15, %c0_16] : memref<1x1x256xf32, #tpu.memory_space<vmem>>, vector<1x1x256xf32>
    %40 = vector.shape_cast %39 : vector<1x1x256xf32> to vector<1x256xf32>
    %41 = vector.shape_cast %38 : vector<1x256xf32> to vector<1x1x256xf32>
    tpu.vector_store %arg5[%c0_14, %c0_15, %c0_16], %41 {strides = array<i32>} : memref<1x1x256xf32, #tpu.memory_space<vmem>>, vector<1x1x256xf32>,
    return
  }
  func.func @transform_0(%arg0: i32, %arg1: i32) -> (i32, i32, i32) {
    %c0_i32 = arith.constant 0 : i32
    %c0_i32_0 = arith.constant 0 : i32
    return %arg0, %c0_i32, %arg1 : i32, i32, i32
  }
  func.func @transform_1(%arg0: i32, %arg1: i32) -> (i32, i32, i32) {
    %c0_i32 = arith.constant 0 : i32
    %c0_i32_0 = arith.constant 0 : i32
    return %arg0, %c0_i32, %arg1 : i32, i32, i32
  }
  func.func @transform_2(%arg0: i32, %arg1: i32) -> (i32, i32) {
    %c0_i32 = arith.constant 0 : i32
    %c0_i32_0 = arith.constant 0 : i32
    %c0_i32_1 = arith.constant 0 : i32
    return %c0_i32, %c0_i32_0 : i32, i32
  }
  func.func @transform_3(%arg0: i32, %arg1: i32) -> (i32, i32, i32) {
    %c0_i32 = arith.constant 0 : i32
    %c0_i32_0 = arith.constant 0 : i32
    return %arg0, %c0_i32, %arg1 : i32, i32, i32
  }
}

</mosaic_0001>

<bundles_post_ra>
// kernel: tpu_custom_call.1
= control target key start
LH: loop header
LB: loop body
LE: loop exit
PB: predicated region body
PF: predicated region fallthrough
CT: control target
= control target key end

     0   :  { %8 = vsyncpa [#allocation3], 0  ;;  %s899_s0 = inlined_call_operand.hbm [shape: f32[2,4,256], index: 0, kind: input, shape index: {}]   ;;  %s900_s1 = inlined_call_operand.vmem [shape: s32[2,1,256], index: 1, kind: input, shape index: {}]   ;;  %s901_s2 = inlined_call_operand.vmem [shape: f32[4,1], index: 2, kind: input, shape index: {}]   ;;  %s902_s3 = inlined_call_operand.hbm [shape: f32[2,1,256], index: 3, kind: output, shape index: {}]  }
   0x1   :  { %10 = vsyncpa [#allocation3 + $0x1], 0 }
   0x2   :  { %11 = vsyncpa [#allocation4], 0 }
   0x3   :  { %13 = vsyncpa [#allocation4 + $0x1], 0  ;;  %s739_s12 = smov 0   ;;  %s741_s13 = smov 0  }
   0x4   :  { %s743_s14 = smov 0   ;;  %s745_s15 = smov 0  }
   0x5   :  { %s747_s16 = smov 0   ;;  %s749_s17 = smov 0  }
   0x6 LB: > { %s507_s18 = sadd.s32 4294967295, %s712_s17   ;;  %s508_s19 = sadd.s32 4294967294, %s712_s17   ;;  %s712_s17 = sphi %s749_s17, %s19_s17   ;;  %s708_s16 = sphi %s747_s16, %s914_s16   ;;  %s704_s15 = sphi %s745_s15, %s913_s15   ;;  %s700_s14 = sphi %s743_s14, %s912_s14   ;;  %s696_s13 = sphi %s741_s13, %s911_s13   ;;  %s692_s12 = sphi %s739_s12, %s910_s12  }
   0x7   : > { %s31_s20 = sadd.s32 1, %s708_s16  ;;  %s40_s21 = sadd.s32 1, %s700_s14 }
   0x8   : > { %p33_p0 = scmp.ge.s32.totalorder %s31_s20, 2  ;;  %p47_p1 = scmp.ne.s32.totalorder %s700_s14, %s696_s13 }
   0x9   : > { %p48_p2 = scmp.eq.s32.totalorder %s712_s17, 0  ;;  %p53_p3 = scmp.ne.s32.totalorder %s696_s13, %s692_s12 }
   0xa   : > { %s916_s20 = smov (%p33_p0, %s31_s20), 0  ;;  %p54_p5 = scmp.eq.s32.totalorder %s507_s18, 0 }
   0xb   : > { %p780_p4 = por %p48_p2, %p47_p1  ;;  %s35_s23 = ssub.s32 %s708_s16, %s916_s20 }
   0xc   : > { %p128_p6 = scmp.eq.s32.totalorder %s507_s18, 1  ;;  %p38_p7 = scmp.eq.s32.totalorder %s35_s23, 0 }
   0xd   : > { %p786_p8 = por %p54_p5, %p53_p3  ;;  %p134_p10 = scmp.eq.s32.totalorder %s508_s19, 1 }
   0xe   : > { %p790_p9 = por %p128_p6, %p47_p1  ;;  %p539_p13 = scmp.lt.s32.totalorder %s712_s17, 2 }
   0xf   : > { %s795_s26 = scalar_select %p38_p7, %s700_s14, %s40_s21  }
  0x10   : > { %p797_p11 = por %p134_p10, %p53_p3  ;;  %s157_s28 = sand.u32 1, %s700_s14  }
  0x11   : > { %s511_s29 = sshll.u32 %s157_s28, 3  ;;  %s525_s30 = sshll.u32 %s708_s16, 7 }
  0x12   : > { %s906_s27 = scalar_select %p797_p11, 1, 0 }
  0x13   : > { %s169_s6 = scalar_lea.hbm %s899_s0, %s525_s30  ;;  %s161_s7 = scalar_lea.vmem [#allocation2], %s511_s29 }
  0x14   : > { %s171_s8 = sshll.u32 %s161_s7, 4  ;;  %p810_p0 = pnand %p539_p13, %p780_p4  ;;  %s172_s8 = int_to_ptr.vmem [resolvable:$true] %s171_s8 }
  0x15   : > { %p514_p1 = scmp.ge.s32.totalorder %s712_s17, 1  ;;  %p188_p2 = scmp.lt.s32.totalorder %s712_s17, 3 }
  0x16   : > { %s158_s10 = scalar_lea.sflag [#allocation3], %s157_s28  ;;  %p606_p3 = pneg %p810_p0 }
  0x17   : > { %s617_s11 = scalar_lea.vmem %s172_s8, 128  ;;  %s714_s18 = smov [#allocation2]  }
  0x18   : > { %p618_p5 = scmp.ne.s32.totalorder %s172_s8, %s617_s11  ;;  %s622_s19 = sshll.u32 %s714_s18, 4  ;;  %s623_s19 = int_to_ptr.vmem [resolvable:$false] %s622_s19 }
  0x19   : > { %s624_s21 = scalar_lea.vmem %s623_s19, 256  ;;  %p625_p10 = scmp.lt.s32.totalorder %s172_s8, %s623_s19 }
  0x1a   : > { %p620_p6 = pnand %p618_p5, %p606_p3  ;;  %p626_p12 = scmp.lt.s32.totalorder %s624_s21, %s617_s11 }
  0x1c   : > { %p621_p7 = pneg %p620_p6  ;;  %p627_p4 = por %p626_p12, %p625_p10 }
  0x1e   : > { %p628_p13 = pnand %p627_p4, %p621_p7 }
  0x20   : > { %631 = shalt.err (!%p628_p13)
}
  0x21   : > { %534 = dma.hbm_to_vmem [thread:$0]  (!%p810_p0), %s169_s6, 128, %s172_s8, %s158_s10  }
  0x22   : > { %p189_p11 = pnand %p514_p1, %p188_p2 }
  0x23   : > { %s825_s22 = sand.u32 (!%p189_p11), 1, %s696_s13  }
  0x24   : > { %192 = sbr.rel (%p189_p11) target bundleno = 208 (0xd0), region = 32  ;;  %s515_s23 = sshll.u32 (!%p189_p11), %s825_s22, 3 }
  0x25   : > { %s195_s28 = scalar_lea.sflag (!%p189_p11), [#allocation3], %s825_s22  ;;  %s198_s29 = scalar_lea.vmem (!%p189_p11), [#allocation2], %s515_s23 }
  0x29   : > { %683 = dma.done.wait (%p786_p8), %s195_s28, 128  }
  0x2a   : > { %685 = vsyncadd (%p786_p8), %s195_s28, 4294967168  ;;  %v715_v0 = vmov 0   ;;  %vm246_vm0 = vcmask 1043456   ;;  %v242_v1 = vld [vmem:[%s901_s2] sm:$0xf]  ;;  %p231_p8 = scmp.lt.s32.totalorder %s704_s15, 1  ;;  %v291_v21 = vlaneseq }
  0x2b   : > { %592 = vset.pattern.permute.xlu0 %v715_v0  ;;  %v240_v2 = vld [vmem:[%s198_s29] sm:$0xff]  ;;  %v716_v36 = vmov 0.0   ;;  %s516_s9 = sshll.u32 %s825_s22, 1  ;;  %s526_s10 = sshll.u32 %s704_s15, 5 }
  0x2c   : > { %331 = vperm.xlu0 %592, %v242_v1   ;;  %v244_v3 = vcombine.high %v240_v2, %v240_v2  ;;  %v247_v4 = vsel %vm246_vm0, %v240_v2, -inf  ;;  %s232_s24 = scalar_select %p231_p8, %s704_s15, 1  ;;  %v841_v23 = vshrl.u32 %v291_v21, 7  ;;  %vm388_vm3 = vcmp.lt.s32.totalorder %v291_v21, 256 }
  0x2d   : > { %v248_v5 = vrot.slane %v247_v4, 4  ;;  %s228_s11 = scalar_lea.vmem [#allocation5], %s516_s9  ;;  %s406_s23 = scalar_lea.hbm %s902_s3, %s526_s10 }
  0x2e   : > { %v254_v6 = vsel %vm246_vm0, %v244_v3, -inf  ;;  %s517_s5 = sshll.u32 %s232_s24, 1  ;;  %v295_v25 = vsub.s32 0, %v841_v23  ;;  %v299_v26 = vsub.s32 1, %v841_v23  ;;  %s408_s18 = sshll.u32 %s228_s11, 4  ;;  %s409_s18 = int_to_ptr.vmem [resolvable:$true] %s408_s18 }
  0x2f   : > { %v255_v7 = vrot.slane %v254_v6, 4  ;;  %v249_v8 = vmax.f32 %v247_v4, %v248_v5  ;;  %s237_s8 = scalar_lea.vmem %s900_s1, %s517_s5  ;;  %s392_s28 = scalar_lea.sflag [#allocation4], %s825_s22 }
  0x30   : > { %v241_v27 = vld [vmem:[%s237_s8] sm:$0x3]  ;;  %s632_s29 = scalar_lea.vmem %s409_s18, 32  ;;  %s718_s30 = smov [#allocation5]  }
  0x31   : > { %v256_v9 = vmax.f32 %v254_v6, %v255_v7  ;;  %v250_v10 = vrot.slane %v249_v8, 2  ;;  %v296_v31 = vrot.slane %v241_v27, %v295_v25  ;;  %v300_v32 = vrot.slane %v241_v27, %v299_v26  ;;  %p633_p11 = scmp.ne.s32.totalorder %s409_s18, %s632_s29  ;;  %s636_s15 = sshll.u32 %s718_s30, 4  ;;  %s637_s15 = int_to_ptr.vmem [resolvable:$false] %s636_s15 }
  0x32   : > { %s638_s4 = scalar_lea.vmem %s637_s15, 64  ;;  %p639_p1 = scmp.lt.s32.totalorder %s409_s18, %s637_s15 }
  0x33   : > { %v257_v11 = vrot.slane %v256_v9, 2  ;;  %v251_v12 = vmax.f32 %v249_v8, %v250_v10  ;;  %vm301_vm1 = vcmp.eq.s32.totalorder %v841_v23, %v296_v31  ;;  %vm302_vm2 = vcmp.eq.s32.totalorder %v841_v23, %v300_v32  ;;  %p634_p12 = pnand %p633_p11, %p790_p9  ;;  %p640_p2 = scmp.lt.s32.totalorder %s638_s4, %s632_s29 }
  0x34   : > { %v518_v37 = vsel %vm301_vm1, 1.0, %v716_v36  ;;  %v519_v38 = vsel %vm302_vm2, 1.0, %v716_v36 }
  0x35   : > { %v258_v13 = vmax.f32 %v256_v9, %v257_v11  ;;  %v252_v14 = vrot.slane %v251_v12, 1  ;;  %v309_v41 = vcombine.low %v518_v37, %v519_v38  ;;  %p635_p0 = pneg %p634_p12  ;;  %p641_p3 = por %p640_p2, %p639_p1 }
  0x37   : > { %v259_v15 = vrot.slane %v258_v13, 1  ;;  %v253_v16 = vmax.f32 %v251_v12, %v252_v14  ;;  %v311_v44 = vmul.f32 %v309_v41, %v240_v2  ;;  %p642_p5 = pnand %p641_p3, %p635_p0 }
  0x39   : > { %v260_v17 = vmax.f32 %v258_v13, %v259_v15  ;;  %v313_v47 = vcombine.high %v311_v44, %v311_v44  ;;  %v315_v50 = vsel %vm246_vm0, %v311_v44, 0.0 }
  0x3a   : > { %v316_v52 = vrot.slane %v315_v50, 4 }
  0x3b   : > { %v263_v18 = vcombine.low %v253_v16, %v260_v17  ;;  %v322_v51 = vsel %vm246_vm0, %v313_v47, 0.0 }
  0x3c   : > { %v323_v53 = vrot.slane %v322_v51, 4  ;;  %v317_v54 = vadd.f32 %v316_v52, %v315_v50 }
  0x3d   : > { %v265_v19 = vsub.f32 %v240_v2, %v263_v18 }
  0x3e   : > { %v324_v55 = vadd.f32 %v323_v53, %v322_v51  ;;  %v318_v56 = vrot.slane %v317_v54, 2 }
  0x3f   : > { %v266_v20 = vmul.f32 1.442695, %v265_v19 }
  0x40   : > { %v325_v57 = vrot.slane %v324_v55, 2  ;;  %v319_v58 = vadd.f32 %v318_v56, %v317_v54 }
  0x41   : > { %594 = vpow2.f32 %v266_v20 }
  0x42   : > { %v326_v60 = vadd.f32 %v325_v57, %v324_v55  ;;  %v320_v63 = vrot.slane %v319_v58, 1 }
  0x44   : > { %v327_v1 = vrot.slane %v326_v60, 1  ;;  %v321_v3 = vadd.f32 %v320_v63, %v319_v58 }
  0x46   : > { %v328_v5 = vadd.f32 %v327_v1, %v326_v60 }
  0x4e   : > { %v595_v22 = vpop.eup %594 }
  0x4f   : > { %v269_v24 = vcombine.high %v595_v22, %v595_v22  ;;  %v271_v28 = vsel %vm246_vm0, %v595_v22, 0.0 }
  0x50   : > { %v272_v30 = vrot.slane %v271_v28, 4 }
  0x51   : > { %v278_v29 = vsel %vm246_vm0, %v269_v24, 0.0 }
  0x52   : > { %v279_v33 = vrot.slane %v278_v29, 4  ;;  %v273_v34 = vadd.f32 %v272_v30, %v271_v28 }
  0x54   : > { %v280_v35 = vadd.f32 %v279_v33, %v278_v29  ;;  %v274_v39 = vrot.slane %v273_v34, 2  ;;  %v717_v29 = vmov 1966171168  }
  0x55   : > { %v372_v30 = vunpack.c.l.s4 %v717_v29 }
  0x56   : > { %v281_v40 = vrot.slane %v280_v35, 2  ;;  %v275_v42 = vadd.f32 %v274_v39, %v273_v34 }
  0x58   : > { %v282_v43 = vadd.f32 %v281_v40, %v280_v35  ;;  %v276_v45 = vrot.slane %v275_v42, 1 }
  0x5a   : > { %v283_v46 = vrot.slane %v282_v43, 1  ;;  %v277_v48 = vadd.f32 %v276_v45, %v275_v42 }
  0x5c   : > { %v284_v49 = vadd.f32 %v283_v46, %v282_v43  ;;  %596 = vlog2.f32 %v277_v48 }
  0x5e   : > { %598 = vlog2.f32 %v284_v49 }
  0x69   : > { %v597_v59 = vpop.eup %596 }
  0x6a   : > { %v286_v62 = vmul.f32 0.6931472, %v597_v59 }
  0x6b   : > { %v599_v61 = vpop.eup %598 }
  0x6c   : > { %v288_v0 = vmul.f32 0.6931472, %v599_v61  ;;  %v289_v2 = vadd.f32 %v286_v62, %v253_v16 }
  0x6e   : > { %v290_v4 = vadd.f32 %v288_v0, %v260_v17  ;;  %v350_v6 = vsub.f32 %v321_v3, %v289_v2 }
  0x70   : > { %v351_v7 = vsub.f32 %v328_v5, %v290_v4  ;;  %v352_v8 = vmul.f32 1.442695, %v350_v6 }
  0x72   : > { %v354_v9 = vmul.f32 1.442695, %v351_v7  ;;  %600 = vpow2.f32 %v352_v8 }
  0x74   : > { %602 = vpow2.f32 %v354_v9 }
  0x7f   : > { %v601_v15 = vpop.eup %600 }
  0x80   : > { %v360_v25 = vsub.f32 1.0, %v601_v15 }
  0x81   : > { %v603_v16 = vpop.eup %602 }
  0x82   : > { %v361_v26 = vsub.f32 1.0, %v603_v16  ;;  %v362_v33 = vmax.f32 %v360_v25, 0.0 }
  0x84   : > { %v363_v34 = vmax.f32 %v361_v26, 0.0  ;;  %v364_v40 = vmul.f32 %v362_v33, %v362_v33 }
  0x86   : > { %v365_v41 = vmul.f32 %v363_v34, %v363_v34 }
  0xa7   : > { %v332_v10 = vpop.permute.xlu0 %331 }
  0xa8   : > { %v334_v11 = vmul.f32 %v518_v37, %v332_v10  ;;  %v335_v12 = vmul.f32 %v519_v38, %v332_v10  ;;  %v373_v37 = vunpack.c.0.s8 %v372_v30 }
  0xaa   : > { %v336_v13 = vsel %vm246_vm0, %v334_v11, 0.0  ;;  %v343_v14 = vsel %vm246_vm0, %v335_v12, 0.0  ;;  %v376_v46 = vsub.s32 %v373_v37, %v841_v23 }
  0xab   : > { %v337_v18 = vrot.slane %v336_v13, 4  ;;  %v344_v19 = vrot.slane %v343_v14, 4 }
  0xad   : > { %v338_v20 = vadd.f32 %v337_v18, %v336_v13  ;;  %v345_v17 = vadd.f32 %v344_v19, %v343_v14 }
  0xaf   : > { %v339_v22 = vrot.slane %v338_v20, 2  ;;  %v346_v24 = vrot.slane %v345_v17, 2 }
  0xb1   : > { %v340_v27 = vadd.f32 %v339_v22, %v338_v20  ;;  %v347_v28 = vadd.f32 %v346_v24, %v345_v17 }
  0xb3   : > { %v341_v31 = vrot.slane %v340_v27, 1  ;;  %v348_v32 = vrot.slane %v347_v28, 1 }
  0xb5   : > { %v342_v35 = vadd.f32 %v341_v31, %v340_v27  ;;  %v349_v36 = vadd.f32 %v348_v32, %v347_v28 }
  0xb7   : > { %v356_v38 = vsub.f32 0.0, %v342_v35  ;;  %v357_v39 = vsub.f32 0.0, %v349_v36 }
  0xb9   : > { %v358_v42 = vmul.f32 %v356_v38, %v350_v6  ;;  %v359_v43 = vmul.f32 %v357_v39, %v351_v7 }
  0xbb   : > { %v366_v44 = vmul.f32 %v364_v40, %v358_v42  ;;  %v367_v45 = vmul.f32 %v365_v41, %v359_v43 }
  0xbd   : > { %v370_v47 = vcombine.low %v366_v44, %v367_v45 }
  0xbf   : > { %v377_v48 = vrot.slane %v370_v47, %v376_v46 }
  0xc1   : > { %v384_v49 = vrot.slane %v377_v48, %v376_v46 }
  0xc3   : > { %390 = vst.msk [vmem:[%s228_s11] sm:$0x3] %vm388_vm3, %v384_v49 }
  0xc4   : > { %645 = shalt.err (!%p642_p5)
}
  0xc5   : > { %s646_s24 = scalar_lea.hbm %s406_s23, 32  ;;  %s650_s6 = scalar_lea.hbm %s902_s3, 64 }
  0xc6   : > { %p647_p6 = scmp.ne.s32.totalorder %s406_s23, %s646_s24  ;;  %p651_p4 = scmp.lt.s32.totalorder %s406_s23, %s902_s3 }
  0xc7   : > { %p652_p13 = scmp.lt.s32.totalorder %s650_s6, %s646_s24 }
  0xc8   : > { %p648_p7 = pnand %p647_p6, %p790_p9 }
  0xc9   : > { %p653_p8 = por %p652_p13, %p651_p4 }
  0xca   : > { %p649_p10 = pneg %p648_p7 }
  0xcc   : > { %p654_p11 = pnand %p653_p8, %p649_p10 }
  0xce   : > { %657 = shalt.err (!%p654_p11)
}
  0xcf   : > { %529 = dma.vmem_to_hbm [thread:$0]  (%p790_p9), %s409_s18, 32, %s406_s23, %s392_s28  }
  0xd0 PF: > { %s420_s9 = sand.u32 1, %s692_s12   ;;  %p908_p12 = scmp.ne.s32.totalorder %s906_s27, 0 }
  0xd1   : > { %p909_p0 = scmp.ge.s32.totalorder %s712_s17, 2  ;;  %s421_s10 = scalar_lea.sflag [#allocation4], %s420_s9 }
  0xd3   : > { %p536_p1 = pnand %p909_p0, %p908_p12 }
  0xd5   : > { %p537_p2 = pneg %p536_p1 }
  0xd7   : > { %687 = dma.done.wait (%p537_p2), %s421_s10, 32  }
  0xd8   : > { %689 = vsyncadd (%p537_p2), %s421_s10, 4294967264  ;;  %s19_s17 = sadd.s32 1, %s712_s17   ;;  %s910_s12 = smov %s696_s13 }
  0xd9   : > { %p16_p3 = scmp.ge.s32.totalorder %s19_s17, 4   ;;  %s911_s13 = smov %s700_s14 }
  0xda   : > { %s912_s14 = smov %s795_s26  ;;  %s913_s15 = smov %s708_s16 }
  0xdb   : > { %s914_s16 = smov %s916_s20  ;;  %18 = sbr.rel (!%p16_p3) target bundleno = 6 (0x6), region = 80 }
  0xe0   :  { %426 = vsyncpa [#allocation3], 1 }
  0xe1   :  { %428 = vsyncpa [#allocation3 + $0x1], 1 }
  0xe2   :  { %429 = vsyncpa [#allocation4], 1 }
  0xe3   :  { %431 = vsyncpa [#allocation4 + $0x1], 1 }

</bundles_post_ra>
